<compile_context>
chip_gen: v7x
topology: tpu7x:2x2x1
jax: 0.10.0
libtpu: 0.0.40
codegen_flags: <defaults>
</compile_context>

<pallas_src>
import functools

import jax
import jax.numpy as jnp
from jax import lax
from jax.experimental import pallas as pl
from jax.experimental.pallas import tpu as pltpu


# ---------------------------------------------------------------------------
# Pallas kernel
# ---------------------------------------------------------------------------
def actor_critic_kernel(
    x_ref,            # [bb, obs]
    w1_ref, b1_ref,   # [obs, 256], [1, 256]
    w2_ref, b2_ref,   # [256, 128], [1, 128]
    wh_ref, bh_ref,   # [128, PAD], [1, PAD]  (fused actor+critic head, zero-padded)
    out_ref,          # [bb, 2*PAD]  lanes [0:PAD)=head output, [PAD:2PAD)=log-probs
    *,
    action_size,
    pad,
):
    x = x_ref[...]

    # shared = Linear(obs,256) -> Tanh -> Linear(256,128) -> Tanh
    h1 = jnp.tanh(
        jnp.dot(x, w1_ref[...], preferred_element_type=jnp.float32) + b1_ref[...]
    )
    h2 = jnp.tanh(
        jnp.dot(h1, w2_ref[...], preferred_element_type=jnp.float32) + b2_ref[...]
    )

    # Fused head: columns [0:A) = actor logits, column A = critic value, rest zero.
    head = jnp.dot(h2, wh_ref[...], preferred_element_type=jnp.float32) + bh_ref[...]
    out_ref[:, :pad] = head

    # Categorical(logits=...) canonical parameterization: logits - logsumexp(logits).
    # Mask padded lanes (value column + zero padding) out of the max / sum.
    col = lax.broadcasted_iota(jnp.int32, (1, pad), 1)
    neg = jnp.where(col < action_size, 0.0, -1e30).astype(jnp.float32)
    masked = head + neg
    m = jnp.max(masked, axis=-1, keepdims=True)
    lse = m + jnp.log(jnp.sum(jnp.exp(masked - m), axis=-1, keepdims=True))
    out_ref[:, pad:] = head - lse


# ---------------------------------------------------------------------------
# Wrapper
# ---------------------------------------------------------------------------
def actor_critic_forward(obs, params, *, max_block_b=512):
    """obs: [B, obs_size] f32. params: dict of pre-transposed weights/biases.

    Returns (logits [B, A], log_probs [B, A], value [B, 1]).
    """
    B, obs_size = obs.shape
    A = params["wa"].shape[1]
    # Lane-dense head width: room for A logits + 1 value, rounded up to 128 lanes.
    pad = ((A + 1 + 127) // 128) * 128

    # --- fuse critic into actor head (zero-padded to `pad` lanes) -------------
    wh = (
        jnp.zeros((128, pad), jnp.float32)
        .at[:, :A].set(params["wa"])
        .at[:, A].set(params["wc"][:, 0])
    )
    bh = (
        jnp.zeros((1, pad), jnp.float32)
        .at[:, :A].set(params["ba"])
        .at[:, A].set(params["bc"][:, 0])
    )

    # --- batch tiling ----------------------------------------------------------
    if B >= max_block_b:
        bb = max_block_b
    else:
        bb = max(8, ((B + 7) // 8) * 8)          # round tiny batches up to 8 rows
    b_pad = ((B + bb - 1) // bb) * bb
    x = obs if b_pad == B else jnp.pad(obs, ((0, b_pad - B), (0, 0)))
    grid = (b_pad // bb,)

    kernel = functools.partial(actor_critic_kernel, action_size=A, pad=pad)

    slab = pl.pallas_call(
        kernel,
        out_shape=jax.ShapeDtypeStruct((b_pad, 2 * pad), jnp.float32),
        grid=grid,
        in_specs=[
            pl.BlockSpec((bb, obs_size), lambda i: (i, 0)),          # x: tiled over batch
            pl.BlockSpec(params["w1"].shape, lambda i: (0, 0)),      # weights stay resident
            pl.BlockSpec(params["b1"].shape, lambda i: (0, 0)),
            pl.BlockSpec(params["w2"].shape, lambda i: (0, 0)),
            pl.BlockSpec(params["b2"].shape, lambda i: (0, 0)),
            pl.BlockSpec((128, pad), lambda i: (0, 0)),
            pl.BlockSpec((1, pad), lambda i: (0, 0)),
        ],
        out_specs=pl.BlockSpec((bb, 2 * pad), lambda i: (i, 0)),
        compiler_params=pltpu.CompilerParams(
            dimension_semantics=("parallel",),   # v7x: shard batch tiles across 2 TCs
        ),
    )(x, params["w1"], params["b1"], params["w2"], params["b2"], wh, bh)

    slab = slab[:B]
    logits = slab[:, :A]
    value = slab[:, A:A + 1]
    logp = slab[:, pad:pad + A]
    # TODO(synk): on v6e/v7x the weights/activations could be cast to bf16 (f32 accum)
    # for 2x MXU throughput; kept f32 here so the same code is optimal on v5e too.
    return logits, logp, value


# ---------------------------------------------------------------------------
# Deterministic parameter init (PyTorch-Linear-like uniform fan-in init)
# ---------------------------------------------------------------------------
def init_params(key, obs_size, action_size):
    def linear(key, fan_in, fan_out):
        kw, kb = jax.random.split(key)
        bound = 1.0 / jnp.sqrt(fan_in)
        w = jax.random.uniform(kw, (fan_in, fan_out), jnp.float32, -bound, bound)
        b = jax.random.uniform(kb, (1, fan_out), jnp.float32, -bound, bound)
        return w, b

    k1, k2, k3, k4 = jax.random.split(key, 4)
    w1, b1 = linear(k1, obs_size, 256)
    w2, b2 = linear(k2, 256, 128)
    wa, ba = linear(k3, 128, action_size)
    wc, bc = linear(k4, 128, 1)
    return dict(w1=w1, b1=b1, w2=w2, b2=b2, wa=wa, ba=ba, wc=wc, bc=bc)


# ---------------------------------------------------------------------------
# Pure-JAX reference (same math as the PyTorch forward)
# ---------------------------------------------------------------------------
def reference_forward(obs, p):
    h1 = jnp.tanh(obs @ p["w1"] + p["b1"])
    h2 = jnp.tanh(h1 @ p["w2"] + p["b2"])
    logits = h2 @ p["wa"] + p["ba"]
    logp = jax.nn.log_softmax(logits, axis=-1)
    value = h2 @ p["wc"] + p["bc"]
    return logits, logp, value


if __name__ == "__main__":
    key = jax.random.PRNGKey(0)
    k_obs, k_par = jax.random.split(key)

    batch = 8
    obs_size = 32
    action_size = 8

    obs = jax.random.normal(k_obs, (batch, obs_size), jnp.float32)
    params = init_params(k_par, obs_size, action_size)

    logits, logp, value = actor_critic_forward(obs, params)
    jax.block_until_ready((logits, logp, value))

    # sanity check against pure-JAX reference
    ref_logits, ref_logp, ref_value = reference_forward(obs, params)
    assert jnp.allclose(logits, ref_logits, atol=1e-4, rtol=1e-4)
    assert jnp.allclose(logp, ref_logp, atol=1e-4, rtol=1e-4)
    assert jnp.allclose(value, ref_value, atol=1e-4, rtol=1e-4)

    print("KERNEL_OK")
</pallas_src>

<mosaic_0001>
module attributes {stable_mosaic.version = 11 : i64} {
  func.func @actor_critic_kernel(%arg0: i32, %arg1: memref<8x32xf32, #tpu.memory_space<vmem>>, %arg2: memref<32x256xf32, #tpu.memory_space<vmem>>, %arg3: memref<1x256xf32, #tpu.memory_space<vmem>>, %arg4: memref<256x128xf32, #tpu.memory_space<vmem>>, %arg5: memref<1x128xf32, #tpu.memory_space<vmem>>, %arg6: memref<128x128xf32, #tpu.memory_space<vmem>>, %arg7: memref<1x128xf32, #tpu.memory_space<vmem>>, %arg8: memref<8x256xf32, #tpu.memory_space<vmem>>) attributes {dimension_semantics = [#tpu.dimension_semantics<parallel>], iteration_bounds = array<i64: 1>, scalar_prefetch = 0 : i64, scratch_operands = 0 : i64, tpu.core_type = #tpu.core_type<tc>, window_params = [{transform_indices = @transform_0, window_bounds = array<i64: 8, 32>}, {pipeline_mode = #tpu.pipeline_mode<synchronous>, transform_indices = @transform_1, window_bounds = array<i64: 32, 256>}, {pipeline_mode = #tpu.pipeline_mode<synchronous>, transform_indices = @transform_2, window_bounds = array<i64: 1, 256>}, {pipeline_mode = #tpu.pipeline_mode<synchronous>, transform_indices = @transform_3, window_bounds = array<i64: 256, 128>}, {pipeline_mode = #tpu.pipeline_mode<synchronous>, transform_indices = @transform_4, window_bounds = array<i64: 1, 128>}, {pipeline_mode = #tpu.pipeline_mode<synchronous>, transform_indices = @transform_5, window_bounds = array<i64: 128, 128>}, {pipeline_mode = #tpu.pipeline_mode<synchronous>, transform_indices = @transform_6, window_bounds = array<i64: 1, 128>}, {transform_indices = @transform_7, window_bounds = array<i64: 8, 256>}]} {
    %c0 = arith.constant 0 : index
    %c0_0 = arith.constant 0 : index
    %0 = vector.load %arg1[%c0, %c0_0] : memref<8x32xf32, #tpu.memory_space<vmem>>, vector<8x32xf32>
    %c0_1 = arith.constant 0 : index
    %c0_2 = arith.constant 0 : index
    %1 = vector.load %arg2[%c0_1, %c0_2] : memref<32x256xf32, #tpu.memory_space<vmem>>, vector<32x256xf32>
    %cst = arith.constant dense<0.000000e+00> : vector<8x256xf32>
    %2 = tpu.matmul %0, %1, %cst {dimension_numbers = #tpu.dot_dimension_numbers<[1], [0], [0], [1], [0, 0, 1, 1], [], []>} : vector<8x32xf32>, vector<32x256xf32>, vector<8x256xf32> -> vector<8x256xf32>
    %c0_3 = arith.constant 0 : index
    %c0_4 = arith.constant 0 : index
    %3 = vector.load %arg3[%c0_3, %c0_4] : memref<1x256xf32, #tpu.memory_space<vmem>>, vector<1x256xf32>
    %4 = vector.broadcast %3 : vector<1x256xf32> to vector<8x256xf32>
    %5 = arith.addf %2, %4 : vector<8x256xf32>
    %6 = math.tanh %5 : vector<8x256xf32>
    %c0_5 = arith.constant 0 : index
    %c0_6 = arith.constant 0 : index
    %7 = vector.load %arg4[%c0_5, %c0_6] : memref<256x128xf32, #tpu.memory_space<vmem>>, vector<256x128xf32>
    %cst_7 = arith.constant dense<0.000000e+00> : vector<8x128xf32>
    %8 = tpu.matmul %6, %7, %cst_7 {dimension_numbers = #tpu.dot_dimension_numbers<[1], [0], [0], [1], [0, 0, 1, 1], [], []>} : vector<8x256xf32>, vector<256x128xf32>, vector<8x128xf32> -> vector<8x128xf32>
    %c0_8 = arith.constant 0 : index
    %c0_9 = arith.constant 0 : index
    %9 = vector.load %arg5[%c0_8, %c0_9] : memref<1x128xf32, #tpu.memory_space<vmem>>, vector<1x128xf32>
    %10 = vector.broadcast %9 : vector<1x128xf32> to vector<8x128xf32>
    %11 = arith.addf %8, %10 : vector<8x128xf32>
    %12 = math.tanh %11 : vector<8x128xf32>
    %c0_10 = arith.constant 0 : index
    %c0_11 = arith.constant 0 : index
    %13 = vector.load %arg6[%c0_10, %c0_11] : memref<128x128xf32, #tpu.memory_space<vmem>>, vector<128x128xf32>
    %cst_12 = arith.constant dense<0.000000e+00> : vector<8x128xf32>
    %14 = tpu.matmul %12, %13, %cst_12 {dimension_numbers = #tpu.dot_dimension_numbers<[1], [0], [0], [1], [0, 0, 1, 1], [], []>} : vector<8x128xf32>, vector<128x128xf32>, vector<8x128xf32> -> vector<8x128xf32>
    %c0_13 = arith.constant 0 : index
    %c0_14 = arith.constant 0 : index
    %15 = vector.load %arg7[%c0_13, %c0_14] : memref<1x128xf32, #tpu.memory_space<vmem>>, vector<1x128xf32>
    %16 = vector.broadcast %15 : vector<1x128xf32> to vector<8x128xf32>
    %17 = arith.addf %14, %16 : vector<8x128xf32>
    %c0_15 = arith.constant 0 : index
    %c0_16 = arith.constant 0 : index
    %18 = vector.load %arg8[%c0_15, %c0_16] : memref<8x256xf32, #tpu.memory_space<vmem>>, vector<8x128xf32>
    tpu.vector_store %arg8[%c0_15, %c0_16], %17 {strides = array<i32>} : memref<8x256xf32, #tpu.memory_space<vmem>>, vector<8x128xf32>,
    %19 = tpu.iota {dimensions = array<i32: 1>} : vector<1x128xi32>
    %c8_i32 = arith.constant 8 : i32
    %20 = vector.broadcast %c8_i32 : i32 to vector<1x128xi32>
    %21 = arith.cmpi slt, %19, %20 : vector<1x128xi32>
    %cst_17 = arith.constant 0.000000e+00 : f32
    %cst_18 = arith.constant -1.000000e+30 : f32
    %22 = vector.broadcast %cst_17 : f32 to vector<1x128xf32>
    %23 = vector.broadcast %cst_18 : f32 to vector<1x128xf32>
    %24 = arith.select %21, %22, %23 : vector<1x128xi1>, vector<1x128xf32>
    %25 = vector.broadcast %24 : vector<1x128xf32> to vector<8x128xf32>
    %26 = arith.addf %17, %25 : vector<8x128xf32>
    %cst_19 = arith.constant dense<0xFF800000> : vector<8xf32>
    %27 = vector.multi_reduction <maximumf>, %26, %cst_19 [1] : vector<8x128xf32> to vector<8xf32>
    %28 = vector.shape_cast %27 : vector<8xf32> to vector<8x1xf32>
    %29 = vector.broadcast %28 : vector<8x1xf32> to vector<8x128xf32>
    %30 = arith.subf %26, %29 : vector<8x128xf32>
    %31 = math.exp %30 : vector<8x128xf32>
    %cst_20 = arith.constant dense<0.000000e+00> : vector<8xf32>
    %32 = vector.multi_reduction <add>, %31, %cst_20 [1] : vector<8x128xf32> to vector<8xf32>
    %33 = vector.shape_cast %32 : vector<8xf32> to vector<8x1xf32>
    %34 = math.log %33 : vector<8x1xf32>
    %35 = arith.addf %28, %34 : vector<8x1xf32>
    %36 = vector.broadcast %35 : vector<8x1xf32> to vector<8x128xf32>
    %37 = arith.subf %17, %36 : vector<8x128xf32>
    %c0_21 = arith.constant 0 : index
    %c128 = arith.constant 128 : index
    %38 = vector.load %arg8[%c0_21, %c128] : memref<8x256xf32, #tpu.memory_space<vmem>>, vector<8x128xf32>
    tpu.vector_store %arg8[%c0_21, %c128], %37 {strides = array<i32>} : memref<8x256xf32, #tpu.memory_space<vmem>>, vector<8x128xf32>,
    return
  }
  func.func @transform_0(%arg0: i32) -> (i32, i32) {
    %c0_i32 = arith.constant 0 : i32
    %c0_i32_0 = arith.constant 0 : i32
    return %arg0, %c0_i32 : i32, i32
  }
  func.func @transform_1(%arg0: i32) -> (i32, i32) {
    %c0_i32 = arith.constant 0 : i32
    %c0_i32_0 = arith.constant 0 : i32
    %c0_i32_1 = arith.constant 0 : i32
    return %c0_i32, %c0_i32_0 : i32, i32
  }
  func.func @transform_2(%arg0: i32) -> (i32, i32) {
    %c0_i32 = arith.constant 0 : i32
    %c0_i32_0 = arith.constant 0 : i32
    %c0_i32_1 = arith.constant 0 : i32
    return %c0_i32, %c0_i32_0 : i32, i32
  }
  func.func @transform_3(%arg0: i32) -> (i32, i32) {
    %c0_i32 = arith.constant 0 : i32
    %c0_i32_0 = arith.constant 0 : i32
    %c0_i32_1 = arith.constant 0 : i32
    return %c0_i32, %c0_i32_0 : i32, i32
  }
  func.func @transform_4(%arg0: i32) -> (i32, i32) {
    %c0_i32 = arith.constant 0 : i32
    %c0_i32_0 = arith.constant 0 : i32
    %c0_i32_1 = arith.constant 0 : i32
    return %c0_i32, %c0_i32_0 : i32, i32
  }
  func.func @transform_5(%arg0: i32) -> (i32, i32) {
    %c0_i32 = arith.constant 0 : i32
    %c0_i32_0 = arith.constant 0 : i32
    %c0_i32_1 = arith.constant 0 : i32
    return %c0_i32, %c0_i32_0 : i32, i32
  }
  func.func @transform_6(%arg0: i32) -> (i32, i32) {
    %c0_i32 = arith.constant 0 : i32
    %c0_i32_0 = arith.constant 0 : i32
    %c0_i32_1 = arith.constant 0 : i32
    return %c0_i32, %c0_i32_0 : i32, i32
  }
  func.func @transform_7(%arg0: i32) -> (i32, i32) {
    %c0_i32 = arith.constant 0 : i32
    %c0_i32_0 = arith.constant 0 : i32
    return %arg0, %c0_i32 : i32, i32
  }
}

</mosaic_0001>

<bundles_post_ra>
// kernel: tpu_custom_call.1
= control target key start
LH: loop header
LB: loop body
LE: loop exit
PB: predicated region body
PF: predicated region fallthrough
CT: control target
= control target key end

     0   :  { %12 = vsyncpa [#allocation3], 0  ;;  %s835_s0 = inlined_call_operand.hbm [shape: f32[8,32], index: 0, kind: input, shape index: {}]   ;;  %s836_s1 = inlined_call_operand.hbm [shape: f32[32,256], index: 1, kind: input, shape index: {}]   ;;  %s837_s2 = inlined_call_operand.vmem [shape: f32[1,256], index: 2, kind: input, shape index: {}]   ;;  %s838_s3 = inlined_call_operand.hbm [shape: f32[256,128], index: 3, kind: input, shape index: {}]   ;;  %s839_s4 = inlined_call_operand.vmem [shape: f32[1,128], index: 4, kind: input, shape index: {}]   ;;  %s840_s5 = inlined_call_operand.hbm [shape: f32[128,128], index: 5, kind: input, shape index: {}]   ;;  %s841_s6 = inlined_call_operand.vmem [shape: f32[1,128], index: 6, kind: input, shape index: {}]   ;;  %s842_s7 = inlined_call_operand.hbm [shape: f32[8,256], index: 7, kind: output, shape index: {}]  }
   0x1   :  { %13 = vsyncpa [#allocation6], 0 }
   0x2   :  { %14 = vsyncpa [#allocation9], 0 }
   0x3   :  { %15 = vsyncpa [#allocation4], 0  ;;  %s711_s24 = smov [#allocation5]   ;;  %s593_s28 = scalar_lea.hbm %s836_s1, 1024 }
   0x4   :  { %s31_s25 = sshll.u32 %s711_s24, 4  ;;  %p594_p0 = scmp.ne.s32.totalorder %s836_s1, %s593_s28  ;;  %s32_s25 = int_to_ptr.vmem [resolvable:$true] %s31_s25 }
   0x5   :  { %p597_p1 = scmp.lt.u32.totalorder %s593_s28, %s836_s1 }
   0x7   :  { %p599_p2 = pnand %p597_p1, %p594_p0 }
   0x9   :  { %602 = shalt.err (!%p599_p2)
}
   0xa   :  { %s603_s10 = scalar_lea.vmem %s32_s25, 1024  ;;  %p608_p4 = scmp.lt.s32.totalorder %s32_s25, %s32_s25 }
   0xb   :  { %p604_p3 = scmp.ne.s32.totalorder %s32_s25, %s603_s10  ;;  %p609_p5 = scmp.lt.s32.totalorder %s603_s10, %s603_s10 }
   0xd   :  { %p610_p6 = por %p609_p5, %p608_p4 }
   0xf   :  { %p611_p7 = pnand %p610_p6, %p604_p3 }
  0x11   :  { %614 = shalt.err (!%p611_p7)
}
  0x12   :  { %s712_s11 = smov 256   ;;  %s713_s12 = smov 16  }
  0x13   :  { %37 = dma.hbm_to_vmem [thread:$0]  %s836_s1, 1024, %s32_s25, [#allocation6], %s712_s11, %s712_s11, %s713_s12  }
  0x14   :  { %s714_s15 = smov [#allocation2]   ;;  %s715_s17 = smov [#allocation7]  }
  0x15   :  { %s22_s16 = sshll.u32 %s714_s15, 4  ;;  %s45_s18 = sshll.u32 %s715_s17, 4  ;;  %s23_s16 = int_to_ptr.vmem [resolvable:$true] %s22_s16  ;;  %s46_s18 = int_to_ptr.vmem [resolvable:$true] %s45_s18 }
  0x16   :  { %s615_s21 = scalar_lea.hbm %s835_s0, 128 }
  0x17   :  { %p616_p8 = scmp.ne.s32.totalorder %s835_s0, %s615_s21  ;;  %p619_p9 = scmp.lt.u32.totalorder %s615_s21, %s835_s0 }
  0x19   :  { %p621_p10 = pnand %p619_p9, %p616_p8 }
  0x1b   :  { %624 = shalt.err (!%p621_p10)
}
  0x1c   :  { %s625_s1 = scalar_lea.vmem %s23_s16, 128  ;;  %p630_p12 = scmp.lt.s32.totalorder %s23_s16, %s23_s16 }
  0x1d   :  { %p626_p11 = scmp.ne.s32.totalorder %s23_s16, %s625_s1  ;;  %p631_p13 = scmp.lt.s32.totalorder %s625_s1, %s625_s1 }
  0x1f   :  { %p632_p0 = por %p631_p13, %p630_p12 }
  0x21   :  { %p633_p1 = pnand %p632_p0, %p626_p11 }
  0x23   :  { %636 = shalt.err (!%p633_p1)
}
  0x24   :  { %25 = dma.hbm_to_vmem [thread:$0]  %s835_s0, 128, %s23_s16, [#allocation3]  }
  0x25   :  { %s637_s30 = scalar_lea.hbm %s838_s3, 4096 }
  0x26   :  { %p638_p2 = scmp.ne.s32.totalorder %s838_s3, %s637_s30  ;;  %p641_p3 = scmp.lt.u32.totalorder %s637_s30, %s838_s3 }
  0x28   :  { %p643_p4 = pnand %p641_p3, %p638_p2 }
  0x2a   :  { %646 = shalt.err (!%p643_p4)
}
  0x2b   :  { %s647_s12 = scalar_lea.vmem %s46_s18, 4096  ;;  %p652_p6 = scmp.lt.s32.totalorder %s46_s18, %s46_s18 }
  0x2c   :  { %p648_p5 = scmp.ne.s32.totalorder %s46_s18, %s647_s12  ;;  %p653_p7 = scmp.lt.s32.totalorder %s647_s12, %s647_s12 }
  0x2e   :  { %p654_p8 = por %p653_p7, %p652_p6 }
  0x30   :  { %p655_p9 = pnand %p654_p8, %p648_p5 }
  0x32   :  { %658 = shalt.err (!%p655_p9)
}
  0x33   :  { %s716_s0 = smov 128   ;;  %s717_s13 = smov 8  }
  0x34   :  { %51 = dma.hbm_to_vmem [thread:$0]  %s838_s3, 4096, %s46_s18, [#allocation6], %s716_s0, %s716_s0, %s717_s13  }
  0x35   :  { %s718_s16 = smov [#allocation8]   ;;  %s659_s21 = scalar_lea.hbm %s840_s5, 2048 }
  0x36   :  { %s59_s17 = sshll.u32 %s718_s16, 4  ;;  %p660_p10 = scmp.ne.s32.totalorder %s840_s5, %s659_s21  ;;  %s60_s17 = int_to_ptr.vmem [resolvable:$true] %s59_s17 }
  0x37   :  { %p663_p11 = scmp.lt.u32.totalorder %s659_s21, %s840_s5 }
  0x39   :  { %p665_p12 = pnand %p663_p11, %p660_p10 }
  0x3b   :  { %668 = shalt.err (!%p665_p12)
}
  0x3c   :  { %s669_s1 = scalar_lea.vmem %s60_s17, 2048  ;;  %p674_p0 = scmp.lt.s32.totalorder %s60_s17, %s60_s17 }
  0x3d   :  { %p670_p13 = scmp.ne.s32.totalorder %s60_s17, %s669_s1  ;;  %p675_p1 = scmp.lt.s32.totalorder %s669_s1, %s669_s1 }
  0x3f   :  { %p676_p2 = por %p675_p1, %p674_p0 }
  0x41   :  { %p677_p3 = pnand %p676_p2, %p670_p13 }
  0x43   :  { %680 = shalt.err (!%p677_p3)
}
  0x44   :  { %65 = dma.hbm_to_vmem [thread:$0]  %s840_s5, 2048, %s60_s17, [#allocation9], %s716_s0, %s716_s0, %s717_s13  }
  0x45   :  { %703 = dma.done.wait [#allocation3], 128  }
  0x46   :  { %704 = vsyncadd [#allocation3], 4294967168 }
  0x47   :  { %705 = dma.done.wait [#allocation6], 5120  }
  0x48   :  { %706 = vsyncadd [#allocation6], 4294962176 }
  0x49   :  { %707 = dma.done.wait [#allocation9], 2048  }
  0x4a   :  { %708 = vsyncadd [#allocation9], 4294965248  ;;  %v719_v0 = vmov 0.0   ;;  %v82_v1 = vld [vmem:[#allocation5 + $0x8] sm:$0xff]  ;;  %v84_v2 = vld [vmem:[#allocation5 + $0x18] sm:$0xff]  ;;  %vm101_vm0 = vcmask 261120  }
  0x4b   :  { %169 = vmatprep.mubr.f32.mxu0 %v719_v0  ;;  %v81_v3 = vld [vmem:[#allocation5] sm:$0xff]  ;;  %v506_v4 = vpack.c.bf16 %v84_v2, %v82_v1  ;;  %v83_v5 = vld [vmem:[#allocation5 + $0x10] sm:$0xff]  ;;  %v86_v6 = vld [vmem:[#allocation5 + $0x28] sm:$0xff]  ;;  %v720_v2 = vmov 0.0|0.0   ;;  %vm721_vm1 = vmmov 0  }
  0x4c   :  { %v88_v7 = vld [vmem:[#allocation5 + $0x38] sm:$0xff]  ;;  %v508_v8 = vpack.c.bf16 %v83_v5, %v81_v3  ;;  %v85_v10 = vld [vmem:[#allocation5 + $0x20] sm:$0xff]  ;;  %v87_v11 = vld [vmem:[#allocation5 + $0x30] sm:$0xff] }
  0x4d   :  { %v510_v9 = vpack.c.bf16 %v88_v7, %v86_v6  ;;  %507 = vmatprep.subr.bf16.mxu0 %v506_v4  ;;  %v194_v12 = vld [vmem:[#allocation7 + $0x80] sm:$0xff]  ;;  %v195_v13 = vld [vmem:[#allocation7 + $0x88] sm:$0xff]  ;;  %v512_v15 = vpack.c.bf16 %v87_v11, %v85_v10  ;;  %v196_v18 = vld [vmem:[#allocation7 + $0x90] sm:$0xff] }
  0x4e   :  { %v178_v14 = vld [vmem:[#allocation7] sm:$0xff]  ;;  %509 = vmatpush1.bf16.msra.mxu0 %v508_v8  ;;  %v514_v16 = vpack.c.bf16 %v195_v13, %v194_v12  ;;  %v179_v17 = vld [vmem:[#allocation7 + $0x8] sm:$0xff]  ;;  %v197_v19 = vld [vmem:[#allocation7 + $0x98] sm:$0xff]  ;;  %v91_v12 = vlaneseq }
  0x4f   :  { %511 = vmatprep.subr.bf16.mxu0 %v510_v9  ;;  %v516_v20 = vpack.c.bf16 %v179_v17, %v178_v14  ;;  %v518_v21 = vpack.c.bf16 %v197_v19, %v196_v18  ;;  %v180_v22 = vld [vmem:[#allocation7 + $0x10] sm:$0xff]  ;;  %v181_v23 = vld [vmem:[#allocation7 + $0x18] sm:$0xff]  ;;  %v198_v24 = vld [vmem:[#allocation7 + $0xa0] sm:$0xff] }
  0x50   :  { %515 = vmatprep.subr.bf16.mxu1 %v514_v16  ;;  %v199_v25 = vld [vmem:[#allocation7 + $0xa8] sm:$0xff]  ;;  %v520_v26 = vpack.c.bf16 %v181_v23, %v180_v22  ;;  %v80_v27 = vld [vmem:[#allocation2] sm:$0xff]  ;;  %v182_v29 = vld [vmem:[#allocation7 + $0x20] sm:$0xff]  ;;  %v92_v13 = vshrl.u32 %v91_v12, 7 }
  0x51   :  { %517 = vmatpush3.bf16.msra.mxu1 %v516_v20  ;;  %v522_v28 = vpack.c.bf16 %v199_v25, %v198_v24  ;;  %v183_v30 = vld [vmem:[#allocation7 + $0x28] sm:$0xff]  ;;  %v200_v31 = vld [vmem:[#allocation7 + $0xb0] sm:$0xff]  ;;  %v201_v32 = vld [vmem:[#allocation7 + $0xb8] sm:$0xff] }
  0x52   :  { %513 = vmatpush1.bf16.msra.mxu0 %v512_v15  ;;  %519 = vmatprep.subr.bf16.mxu1 %v518_v21  ;;  %v524_v33 = vpack.c.bf16 %v183_v30, %v182_v29  ;;  %v526_v34 = vpack.c.bf16 %v201_v32, %v200_v31  ;;  %v184_v35 = vld [vmem:[#allocation7 + $0x30] sm:$0xff]  ;;  %v185_v36 = vld [vmem:[#allocation7 + $0x38] sm:$0xff]  ;;  %v202_v38 = vld [vmem:[#allocation7 + $0xc0] sm:$0xff]  ;;  %v93_v14 = vsub.s32 0, %v92_v13  ;;  %v97_v16 = vsub.s32 1, %v92_v13 }
  0x53   :  { %v528_v37 = vpack.c.bf16 %v185_v36, %v184_v35  ;;  %v203_v39 = vld [vmem:[#allocation7 + $0xc8] sm:$0xff]  ;;  %v186_v41 = vld [vmem:[#allocation7 + $0x40] sm:$0xff]  ;;  %v204_v44 = vld [vmem:[#allocation7 + $0xd0] sm:$0xff]  ;;  %546 = vmatprep.subr.bf16.mxu0 %v720_v2 }
  0x54   :  { %v530_v40 = vpack.c.bf16 %v203_v39, %v202_v38  ;;  %v187_v42 = vld [vmem:[#allocation7 + $0x48] sm:$0xff]  ;;  %v205_v45 = vld [vmem:[#allocation7 + $0xd8] sm:$0xff]  ;;  %v188_v47 = vld [vmem:[#allocation7 + $0x50] sm:$0xff] }
  0x55   :  { %416 = vmatmul.mubr.msk.f32.vlgmr.msra.gmra.mrb[0].mxu0 %vm101_vm0, %v80_v27  ;;  %521 = vmatpush3.bf16.msra.mxu1 %v520_v26  ;;  %v532_v43 = vpack.c.bf16 %v187_v42, %v186_v41  ;;  %v534_v46 = vpack.c.bf16 %v205_v45, %v204_v44  ;;  %v189_v48 = vld [vmem:[#allocation7 + $0x58] sm:$0xff]  ;;  %v206_v50 = vld [vmem:[#allocation7 + $0xe0] sm:$0xff]  ;;  %v207_v51 = vld [vmem:[#allocation7 + $0xe8] sm:$0xff]  ;;  %v722_v45 = vmov -1e+30  }
  0x56   :  { %523 = vmatprep.subr.bf16.mxu1 %v522_v28  ;;  %v536_v49 = vpack.c.bf16 %v189_v48, %v188_v47  ;;  %v190_v52 = vld [vmem:[#allocation7 + $0x60] sm:$0xff]  ;;  %v538_v53 = vpack.c.bf16 %v207_v51, %v206_v50  ;;  %v191_v54 = vld [vmem:[#allocation7 + $0x68] sm:$0xff]  ;;  %v208_v55 = vld [vmem:[#allocation7 + $0xf0] sm:$0xff]  ;;  %503 = vmatprep.mubr.msk.f32.mxu0 %vm721_vm1, %v719_v0 }
  0x57   :  { %v209_v56 = vld [vmem:[#allocation7 + $0xf8] sm:$0xff]  ;;  %v540_v57 = vpack.c.bf16 %v191_v54, %v190_v52  ;;  %v192_v59 = vld [vmem:[#allocation7 + $0x70] sm:$0xff]  ;;  %v288_v62 = vld [vmem:[#allocation8] sm:$0xff] }
  0x58   :  { %v542_v58 = vpack.c.bf16 %v209_v56, %v208_v55  ;;  %v193_v60 = vld [vmem:[#allocation7 + $0x78] sm:$0xff]  ;;  %v289_v63 = vld [vmem:[#allocation8 + $0x8] sm:$0xff]  ;;  %v290_v1 = vld [vmem:[#allocation8 + $0x10] sm:$0xff] }
  0x59   :  { %525 = vmatpush3.bf16.msra.mxu1 %v524_v33  ;;  %v544_v61 = vpack.c.bf16 %v193_v60, %v192_v59  ;;  %v547_v3 = vpack.c.bf16 %v289_v63, %v288_v62  ;;  %v291_v4 = vld [vmem:[#allocation8 + $0x18] sm:$0xff]  ;;  %v292_v6 = vld [vmem:[#allocation8 + $0x20] sm:$0xff]  ;;  %v293_v7 = vld [vmem:[#allocation8 + $0x28] sm:$0xff] }
  0x5a   :  { %527 = vmatprep.subr.bf16.mxu1 %v526_v34  ;;  %v550_v5 = vpack.c.bf16 %v291_v4, %v290_v1  ;;  %v553_v8 = vpack.c.bf16 %v293_v7, %v292_v6  ;;  %v294_v9 = vld [vmem:[#allocation8 + $0x30] sm:$0xff]  ;;  %v295_v10 = vld [vmem:[#allocation8 + $0x38] sm:$0xff]  ;;  %v296_v25 = vld [vmem:[#allocation8 + $0x40] sm:$0xff] }
  0x5b   :  { %548 = vmatpush3.bf16.msra.mxu0 %v547_v3  ;;  %v556_v11 = vpack.c.bf16 %v295_v10, %v294_v9  ;;  %v89_v15 = vld [vmem:[%s837_s2] sm:$0x3]  ;;  %v297_v26 = vld [vmem:[#allocation8 + $0x48] sm:$0xff]  ;;  %v298_v28 = vld [vmem:[#allocation8 + $0x50] sm:$0xff] }
  0x5c   :  { %549 = vmatprep.subr.bf16.mxu0 %v720_v2  ;;  %v94_v17 = vrot.slane %v89_v15, %v93_v14  ;;  %v98_v18 = vrot.slane %v89_v15, %v97_v16  ;;  %v559_v27 = vpack.c.bf16 %v297_v26, %v296_v25  ;;  %v299_v29 = vld [vmem:[#allocation8 + $0x58] sm:$0xff]  ;;  %v300_v31 = vld [vmem:[#allocation8 + $0x60] sm:$0xff]  ;;  %v301_v32 = vld [vmem:[#allocation8 + $0x68] sm:$0xff] }
  0x5d   :  { %529 = vmatpush3.bf16.msra.mxu1 %v528_v37  ;;  %v562_v30 = vpack.c.bf16 %v299_v29, %v298_v28  ;;  %v565_v33 = vpack.c.bf16 %v301_v32, %v300_v31  ;;  %v302_v34 = vld [vmem:[#allocation8 + $0x70] sm:$0xff]  ;;  %v303_v35 = vld [vmem:[#allocation8 + $0x78] sm:$0xff] }
  0x5e   :  { %531 = vmatprep.subr.bf16.mxu1 %v530_v40  ;;  %v568_v36 = vpack.c.bf16 %v303_v35, %v302_v34  ;;  %v417_v38 = vld [vmem:[%s839_s4] ss:$0 sm:$0xff]  ;;  %s723_s4 = smov [#allocation10]  }
  0x5f   :  { %551 = vmatpush3.bf16.msra.mxu0 %v550_v5  ;;  %v418_v0 = vld [vmem:[%s841_s6] ss:$0 sm:$0xff]  ;;  %s405_s6 = sshll.u32 %s723_s4, 4  ;;  %s406_s6 = int_to_ptr.vmem [resolvable:$true] %s405_s6 }
  0x60   :  { %552 = vmatprep.subr.bf16.mxu0 %v720_v2  ;;  %s681_s30 = scalar_lea.vmem %s406_s6, 256  ;;  %p686_p5 = scmp.lt.s32.totalorder %s406_s6, %s406_s6 }
  0x61   :  { %533 = vmatpush3.bf16.msra.mxu1 %v532_v43  ;;  %v383_v43 = vand.u32 127, %v91_v12  ;;  %p682_p4 = scmp.ne.s32.totalorder %s406_s6, %s681_s30  ;;  %p687_p6 = scmp.lt.s32.totalorder %s681_s30, %s681_s30 }
  0x62   :  { %535 = vmatprep.subr.bf16.mxu1 %v534_v46 }
  0x63   :  { %554 = vmatpush3.bf16.msra.mxu0 %v553_v8  ;;  %vm384_vm2 = vcmp.lt.s32.totalorder %v383_v43, 8  ;;  %p688_p7 = por %p687_p6, %p686_p5 }
  0x64   :  { %555 = vmatprep.subr.bf16.mxu0 %v720_v2  ;;  %v385_v46 = vsel %vm384_vm2, 0.0, %v722_v45 }
  0x65   :  { %537 = vmatpush3.bf16.msra.mxu1 %v536_v49  ;;  %p689_p8 = pnand %p688_p7, %p682_p4 }
  0x66   :  { %539 = vmatprep.subr.bf16.mxu1 %v538_v53 }
  0x67   :  { %557 = vmatpush3.bf16.msra.mxu0 %v556_v11 }
  0x68   :  { %558 = vmatprep.subr.bf16.mxu0 %v720_v2 }
  0x69   :  { %541 = vmatpush3.bf16.msra.mxu1 %v540_v57 }
  0x6a   :  { %543 = vmatprep.subr.bf16.mxu1 %v542_v58 }
  0x6b   :  { %560 = vmatpush3.bf16.msra.mxu0 %v559_v27 }
  0x6c   :  { %561 = vmatprep.subr.bf16.mxu0 %v720_v2 }
  0x6d   :  { %545 = vmatpush3.bf16.msra.mxu1 %v544_v61 }
  0x6f   :  { %563 = vmatpush3.bf16.msra.mxu0 %v562_v30 }
  0x70   :  { %564 = vmatprep.subr.bf16.mxu0 %v720_v2 }
  0x73   :  { %566 = vmatpush3.bf16.msra.mxu0 %v565_v33 }
  0x74   :  { %567 = vmatprep.subr.bf16.mxu0 %v720_v2 }
  0x77   :  { %569 = vmatpush3.bf16.msra.mxu0 %v568_v36 }
 0x128   :  { %v171_v19 = vpop.f32.mrb[0].mxu0 }
 0x129   :  { %v172_v20 = vadd.f32 %v171_v19, %v94_v17  ;;  %v173_v21 = vpop.f32.mrb[1].mxu0 }
 0x12a   :  { %v174_v22 = vadd.f32 %v173_v21, %v98_v18 }
 0x12c   :  { %583 = vtanh.f32 %v174_v22 }
 0x12d   :  { %585 = vtanh.f32 %v172_v20 }
 0x136   :  { %v584_v23 = vpop.eup %583 }
 0x137   :  { %v586_v24 = vpop.eup %585  ;;  %281 = vmatprep.mubr.f32.mxu1 %v584_v23 }
 0x138   :  { %282 = vmatmul.mubr.f32.vlgmr.msra.gmra.mrb[0].mxu1 %v586_v24 }
 0x20b   :  { %v451_v37 = vpop.f32.mrb[0].mxu1 }
 0x20c   :  { %v452_v39 = vpop.f32.mrb[1].mxu1 }
 0x20d   :  { %v453_v40 = vadd.f32 %v452_v39, %v451_v37 }
 0x20f   :  { %v284_v41 = vadd.f32 %v453_v40, %v417_v38 }
 0x211   :  { %587 = vtanh.f32 %v284_v41 }
 0x21b   :  { %v588_v42 = vpop.eup %587 }
 0x21c   :  { %504 = vmatmul.mubr.f32.vlgmr.msra.gmra.mrb[2].mxu0 %v588_v42 }
 0x2ef   :  { %v377_v44 = vpop.f32.mrb[2].mxu0 }
 0x2f0   :  { %v378_v47 = vadd.f32 %v418_v0, %v377_v44  ;;  %v505_v48 = vpop.f32.mrb[3].mxu0 }
 0x2f2   :  { %381 = vst [vmem:[#allocation10] sm:$0xff] %v378_v47  ;;  %v386_v49 = vadd.f32 %v385_v46, %v378_v47 }
 0x2f4   :  { %387 = vmax.xlane.f32.xlu0 %v386_v49 }
 0x381   :  { %v388_v50 = vpop.xlane.xlu0 %387 }
 0x382   :  { %v389_v51 = vsub.f32 %v386_v49, %v388_v50 }
 0x384   :  { %v390_v52 = vmul.f32 1.442695, %v389_v51 }
 0x386   :  { %589 = vpow2.f32 %v390_v52 }
 0x390   :  { %v590_v53 = vpop.eup %589 }
 0x391   :  { %392 = vadd.xlane.f32.xlu0 %v590_v53 }
 0x41e   :  { %v393_v54 = vpop.xlane.xlu0 %392 }
 0x41f   :  { %591 = vlog2.f32 %v393_v54 }
 0x429   :  { %v592_v55 = vpop.eup %591 }
 0x42a   :  { %v395_v56 = vmul.f32 0.6931472, %v592_v55 }
 0x42c   :  { %v396_v57 = vadd.f32 %v395_v56, %v388_v50 }
 0x42e   :  { %v397_v58 = vsub.f32 %v378_v47, %v396_v57 }
 0x430   :  { %398 = vst [vmem:[#allocation10 + $0x8] sm:$0xff] %v397_v58 }
 0x431   :  { %692 = shalt.err (!%p689_p8)
}
 0x432   :  { %s693_s10 = scalar_lea.hbm %s842_s7, 256 }
 0x433   :  { %p694_p9 = scmp.ne.s32.totalorder %s842_s7, %s693_s10  ;;  %p697_p10 = scmp.lt.u32.totalorder %s693_s10, %s842_s7 }
 0x435   :  { %p699_p11 = pnand %p697_p10, %p694_p9 }
 0x437   :  { %702 = shalt.err (!%p699_p11)
}
 0x438   :  { %408 = dma.vmem_to_hbm [thread:$0]  %s406_s6, 256, %s842_s7, [#allocation4]  }
 0x439   :  { %709 = dma.done.wait [#allocation4], 256  }
 0x43a   :  { %710 = vsyncadd [#allocation4], 4294967040 }
 0x43b   :  { %412 = vsyncpa [#allocation3], 1 }
 0x43c   :  { %413 = vsyncpa [#allocation6], 1 }
 0x43d   :  { %414 = vsyncpa [#allocation9], 1 }
 0x43e   :  { %415 = vsyncpa [#allocation4], 1 }

</bundles_post_ra>
